<compile_context>
chip_gen: v6e
topology: v6e:2x2x1
jax: 0.10.0
libtpu: 0.0.40
codegen_flags: <defaults>
</compile_context>

<pallas_src>
import functools

import jax
import jax.numpy as jnp
from jax import lax
from jax.experimental import pallas as pl
from jax.experimental.pallas import tpu as pltpu

LOG_STD_MAX = 2.0
LOG_STD_MIN = -5.0

_HIDDEN = 256
_TB_MAX = 2048  # max batch-tile rows


def _round_up(x, m):
    return (x + m - 1) // m * m


def _cdiv(a, b):
    return (a + b - 1) // b


def _actor_kernel(x_ref, w1_ref, b1_ref, w2_ref, b2_ref, wh_ref, bh_ref,
                  out_ref, *, act_dim):
    # fc1 + relu  (bf16 operands on MXU, f32 accumulate, f32 elementwise)
    h1 = jnp.dot(x_ref[...], w1_ref[...], preferred_element_type=jnp.float32)
    h1 = jnp.maximum(h1 + b1_ref[...], 0.0)

    # fc2 + relu
    h2 = jnp.dot(h1.astype(jnp.bfloat16), w2_ref[...],
                 preferred_element_type=jnp.float32)
    h2 = jnp.maximum(h2 + b2_ref[...], 0.0)

    # fused heads, single lane-dense matmul into one 128-aligned slab:
    #   cols [0, act_dim)           -> mean
    #   cols [act_dim, 2*act_dim)   -> log_std (tanh + affine applied below)
    #   cols [2*act_dim, out_pad)   -> zero padding (never read by the wrapper)
    heads = jnp.dot(h2.astype(jnp.bfloat16), wh_ref[...],
                    preferred_element_type=jnp.float32) + bh_ref[...]

    # tanh + affine strictly on the log_std columns; mean columns untouched.
    col = lax.broadcasted_iota(jnp.int32, heads.shape, 1)
    squashed = LOG_STD_MIN + 0.5 * (LOG_STD_MAX - LOG_STD_MIN) * (
        jnp.tanh(heads) + 1.0)
    out = jnp.where(col >= act_dim, squashed, heads)

    # single lane-dense (128-aligned, unmasked) bf16 store.
    out_ref[...] = out.astype(out_ref.dtype)


@functools.partial(jax.jit, static_argnames=("act_dim",))
def actor_forward(x, kparams, *, act_dim):
    """x: [B, OBS] float32.  kparams: fused/padded bf16 kernel params."""
    B, obs_dim = x.shape
    obs_pad = kparams["w1"].shape[0]
    out_pad = kparams["wh"].shape[1]

    # guard against an inconsistent (kparams, act_dim) pair silently slicing
    # the wrong columns out of the fused head slab.
    assert out_pad == _round_up(2 * act_dim, 128), (out_pad, act_dim)
    assert obs_pad >= obs_dim, (obs_pad, obs_dim)

    # Batch tiling: pad B to a sublane multiple, then pick a balanced tile so
    # (a) there are >= 2 grid steps whenever b_pad >= 16 (v7x has 2 TCs) and
    # (b) tiles stay <= _TB_MAX with minimal tail padding.
    b0 = _round_up(max(B, 1), 8)
    if b0 >= 16:
        n_steps = max(2, _cdiv(b0, _TB_MAX))
        tb = _round_up(_cdiv(b0, n_steps), 8)
        b_pad = _round_up(b0, tb)
    else:
        tb = b0
        b_pad = b0
    grid = (b_pad // tb,)

    # Zero-pad batch rows and obs columns (lane-dense K for fc1).
    x_p = jnp.zeros((b_pad, obs_pad), jnp.bfloat16)
    x_p = x_p.at[:B, :obs_dim].set(x.astype(jnp.bfloat16))

    # Weights/biases: full-array blocks with constant index_map -> fetched once,
    # VMEM-resident across grid steps.
    def resident(arr):
        return pl.BlockSpec(arr.shape, lambda i: (0, 0))

    out = pl.pallas_call(
        functools.partial(_actor_kernel, act_dim=act_dim),
        out_shape=jax.ShapeDtypeStruct((b_pad, out_pad), jnp.bfloat16),
        grid=grid,
        in_specs=[
            pl.BlockSpec((tb, obs_pad), lambda i: (i, 0)),   # x tile: pipelined
            resident(kparams["w1"]),
            resident(kparams["b1"]),
            resident(kparams["w2"]),
            resident(kparams["b2"]),
            resident(kparams["wh"]),
            resident(kparams["bh"]),
        ],
        out_specs=pl.BlockSpec((tb, out_pad), lambda i: (i, 0)),
        compiler_params=pltpu.CompilerParams(
            dimension_semantics=("parallel",),       # megacore / v7x dual-TC
            vmem_limit_bytes=32 * 1024 * 1024,       # safe on v5e/v6e/v7x
        ),
    )(x_p, kparams["w1"], kparams["b1"], kparams["w2"], kparams["b2"],
      kparams["wh"], kparams["bh"])

    mean = out[:B, :act_dim].astype(jnp.float32)
    log_std = out[:B, act_dim:2 * act_dim].astype(jnp.float32)
    return mean, log_std


def init_actor_params(key, obs_dim, act_dim, hidden=_HIDDEN):
    """Deterministic init mimicking nn.Linear default (uniform +-1/sqrt(fan_in)).
    Weights stored already transposed to [in, out]; kept in f32 for reference."""
    def linear(k, fan_in, fan_out):
        kw, kb = jax.random.split(k)
        bound = 1.0 / jnp.sqrt(jnp.float32(fan_in))
        w = jax.random.uniform(kw, (fan_in, fan_out), jnp.float32, -bound, bound)
        b = jax.random.uniform(kb, (1, fan_out), jnp.float32, -bound, bound)
        return w, b

    k1, k2, k3, k4 = jax.random.split(key, 4)
    w1, b1 = linear(k1, obs_dim, hidden)
    w2, b2 = linear(k2, hidden, hidden)
    wm, bm = linear(k3, hidden, act_dim)
    ws, bs = linear(k4, hidden, act_dim)
    return dict(w1=w1, b1=b1, w2=w2, b2=b2, wm=wm, bm=bm, ws=ws, bs=bs)


def prepare_kernel_params(p):
    """Pack both heads into one round_up(2*act_dim,128)-wide slab, lane-pad the
    fc1 contraction dim, and cast MXU operands to bf16."""
    obs_dim, hidden = p["w1"].shape
    act_dim = p["wm"].shape[1]
    obs_pad = _round_up(obs_dim, 128)
    out_pad = _round_up(2 * act_dim, 128)

    w1 = jnp.zeros((obs_pad, hidden), jnp.float32).at[:obs_dim].set(p["w1"])

    wh = jnp.zeros((hidden, out_pad), jnp.float32)
    wh = wh.at[:, :act_dim].set(p["wm"])
    wh = wh.at[:, act_dim:2 * act_dim].set(p["ws"])
    bh = jnp.zeros((1, out_pad), jnp.float32)
    bh = bh.at[:, :act_dim].set(p["bm"])
    bh = bh.at[:, act_dim:2 * act_dim].set(p["bs"])

    return dict(
        w1=w1.astype(jnp.bfloat16), b1=p["b1"],
        w2=p["w2"].astype(jnp.bfloat16), b2=p["b2"],
        wh=wh.astype(jnp.bfloat16), bh=bh,
    )


def actor_forward_ref(x, p):
    """Pure-JAX f32 reference for correctness check."""
    h1 = jnp.maximum(x @ p["w1"] + p["b1"], 0.0)
    h2 = jnp.maximum(h1 @ p["w2"] + p["b2"], 0.0)
    mean = h2 @ p["wm"] + p["bm"]
    log_std = jnp.tanh(h2 @ p["ws"] + p["bs"])
    log_std = LOG_STD_MIN + 0.5 * (LOG_STD_MAX - LOG_STD_MIN) * (log_std + 1.0)
    return mean, log_std


if __name__ == "__main__":
    # Small synthetic env: obs_dim=16, act_dim=8, batch=2.
    B, OBS, ACT = 2, 16, 8

    key = jax.random.PRNGKey(0)
    kx, kp = jax.random.split(key)
    x = jax.random.normal(kx, (B, OBS), jnp.float32)
    params = init_actor_params(kp, OBS, ACT)
    kparams = prepare_kernel_params(params)

    mean, log_std = actor_forward(x, kparams, act_dim=ACT)
    jax.block_until_ready((mean, log_std))

    # sanity check against plain-JAX f32 reference
    # (bf16 MXU operands + bf16 output slab -> loose tolerances)
    mean_ref, log_std_ref = actor_forward_ref(x, params)
    assert mean.shape == (B, ACT) and log_std.shape == (B, ACT)
    assert jnp.allclose(mean, mean_ref, atol=5e-2, rtol=5e-2), \
        float(jnp.max(jnp.abs(mean - mean_ref)))
    assert jnp.allclose(log_std, log_std_ref, atol=5e-2, rtol=5e-2), \
        float(jnp.max(jnp.abs(log_std - log_std_ref)))

    # TODO(synk): get_action's Normal.rsample / log_prob (stochastic sampling +
    # tanh-squash correction, action_scale/bias) is distribution logic left
    # outside the kernel; for tiny-batch inference it could be fused in-kernel
    # with pltpu.prng_seed / prng_random_bits.
    print("KERNEL_OK")
</pallas_src>

<mosaic_0001>
module attributes {stable_mosaic.version = 11 : i64} {
  func.func @_actor_kernel(%arg0: i32, %arg1: memref<8x128xbf16, #tpu.memory_space<vmem>>, %arg2: memref<128x256xbf16, #tpu.memory_space<vmem>>, %arg3: memref<1x256xf32, #tpu.memory_space<vmem>>, %arg4: memref<256x256xbf16, #tpu.memory_space<vmem>>, %arg5: memref<1x256xf32, #tpu.memory_space<vmem>>, %arg6: memref<256x128xbf16, #tpu.memory_space<vmem>>, %arg7: memref<1x128xf32, #tpu.memory_space<vmem>>, %arg8: memref<8x128xbf16, #tpu.memory_space<vmem>>) attributes {dimension_semantics = [#tpu.dimension_semantics<parallel>], iteration_bounds = array<i64: 1>, scalar_prefetch = 0 : i64, scratch_operands = 0 : i64, tpu.core_type = #tpu.core_type<tc>, window_params = [{transform_indices = @transform_0, window_bounds = array<i64: 8, 128>}, {pipeline_mode = #tpu.pipeline_mode<synchronous>, transform_indices = @transform_1, window_bounds = array<i64: 128, 256>}, {pipeline_mode = #tpu.pipeline_mode<synchronous>, transform_indices = @transform_2, window_bounds = array<i64: 1, 256>}, {pipeline_mode = #tpu.pipeline_mode<synchronous>, transform_indices = @transform_3, window_bounds = array<i64: 256, 256>}, {pipeline_mode = #tpu.pipeline_mode<synchronous>, transform_indices = @transform_4, window_bounds = array<i64: 1, 256>}, {pipeline_mode = #tpu.pipeline_mode<synchronous>, transform_indices = @transform_5, window_bounds = array<i64: 256, 128>}, {pipeline_mode = #tpu.pipeline_mode<synchronous>, transform_indices = @transform_6, window_bounds = array<i64: 1, 128>}, {transform_indices = @transform_7, window_bounds = array<i64: 8, 128>}]} {
    %c0 = arith.constant 0 : index
    %c0_0 = arith.constant 0 : index
    %0 = vector.load %arg1[%c0, %c0_0] : memref<8x128xbf16, #tpu.memory_space<vmem>>, vector<8x128xbf16>
    %c0_1 = arith.constant 0 : index
    %c0_2 = arith.constant 0 : index
    %1 = vector.load %arg2[%c0_1, %c0_2] : memref<128x256xbf16, #tpu.memory_space<vmem>>, vector<128x256xbf16>
    %cst = arith.constant dense<0.000000e+00> : vector<8x256xf32>
    %2 = tpu.matmul %0, %1, %cst {dimension_numbers = #tpu.dot_dimension_numbers<[1], [0], [0], [1], [0, 0, 1, 1], [], []>} : vector<8x128xbf16>, vector<128x256xbf16>, vector<8x256xf32> -> vector<8x256xf32>
    %c0_3 = arith.constant 0 : index
    %c0_4 = arith.constant 0 : index
    %3 = vector.load %arg3[%c0_3, %c0_4] : memref<1x256xf32, #tpu.memory_space<vmem>>, vector<1x256xf32>
    %4 = vector.broadcast %3 : vector<1x256xf32> to vector<8x256xf32>
    %5 = arith.addf %2, %4 : vector<8x256xf32>
    %cst_5 = arith.constant 0.000000e+00 : f32
    %6 = vector.broadcast %cst_5 : f32 to vector<8x256xf32>
    %7 = arith.maximumf %5, %6 : vector<8x256xf32>
    %8 = arith.truncf %7 : vector<8x256xf32> to vector<8x256xbf16>
    %c0_6 = arith.constant 0 : index
    %c0_7 = arith.constant 0 : index
    %9 = vector.load %arg4[%c0_6, %c0_7] : memref<256x256xbf16, #tpu.memory_space<vmem>>, vector<256x256xbf16>
    %cst_8 = arith.constant dense<0.000000e+00> : vector<8x256xf32>
    %10 = tpu.matmul %8, %9, %cst_8 {dimension_numbers = #tpu.dot_dimension_numbers<[1], [0], [0], [1], [0, 0, 1, 1], [], []>} : vector<8x256xbf16>, vector<256x256xbf16>, vector<8x256xf32> -> vector<8x256xf32>
    %c0_9 = arith.constant 0 : index
    %c0_10 = arith.constant 0 : index
    %11 = vector.load %arg5[%c0_9, %c0_10] : memref<1x256xf32, #tpu.memory_space<vmem>>, vector<1x256xf32>
    %12 = vector.broadcast %11 : vector<1x256xf32> to vector<8x256xf32>
    %13 = arith.addf %10, %12 : vector<8x256xf32>
    %cst_11 = arith.constant 0.000000e+00 : f32
    %14 = vector.broadcast %cst_11 : f32 to vector<8x256xf32>
    %15 = arith.maximumf %13, %14 : vector<8x256xf32>
    %16 = arith.truncf %15 : vector<8x256xf32> to vector<8x256xbf16>
    %c0_12 = arith.constant 0 : index
    %c0_13 = arith.constant 0 : index
    %17 = vector.load %arg6[%c0_12, %c0_13] : memref<256x128xbf16, #tpu.memory_space<vmem>>, vector<256x128xbf16>
    %cst_14 = arith.constant dense<0.000000e+00> : vector<8x128xf32>
    %18 = tpu.matmul %16, %17, %cst_14 {dimension_numbers = #tpu.dot_dimension_numbers<[1], [0], [0], [1], [0, 0, 1, 1], [], []>} : vector<8x256xbf16>, vector<256x128xbf16>, vector<8x128xf32> -> vector<8x128xf32>
    %c0_15 = arith.constant 0 : index
    %c0_16 = arith.constant 0 : index
    %19 = vector.load %arg7[%c0_15, %c0_16] : memref<1x128xf32, #tpu.memory_space<vmem>>, vector<1x128xf32>
    %20 = vector.broadcast %19 : vector<1x128xf32> to vector<8x128xf32>
    %21 = arith.addf %18, %20 : vector<8x128xf32>
    %22 = tpu.iota {dimensions = array<i32: 1>} : vector<8x128xi32>
    %23 = math.tanh %21 : vector<8x128xf32>
    %cst_17 = arith.constant 1.000000e+00 : f32
    %24 = vector.broadcast %cst_17 : f32 to vector<8x128xf32>
    %25 = arith.addf %23, %24 : vector<8x128xf32>
    %cst_18 = arith.constant 3.500000e+00 : f32
    %26 = vector.broadcast %cst_18 : f32 to vector<8x128xf32>
    %27 = arith.mulf %26, %25 : vector<8x128xf32>
    %cst_19 = arith.constant -5.000000e+00 : f32
    %28 = vector.broadcast %cst_19 : f32 to vector<8x128xf32>
    %29 = arith.addf %28, %27 : vector<8x128xf32>
    %c8_i32 = arith.constant 8 : i32
    %30 = vector.broadcast %c8_i32 : i32 to vector<8x128xi32>
    %31 = arith.cmpi sge, %22, %30 : vector<8x128xi32>
    %32 = arith.select %31, %29, %21 : vector<8x128xi1>, vector<8x128xf32>
    %33 = arith.truncf %32 : vector<8x128xf32> to vector<8x128xbf16>
    %c0_20 = arith.constant 0 : index
    %c0_21 = arith.constant 0 : index
    %34 = vector.load %arg8[%c0_20, %c0_21] : memref<8x128xbf16, #tpu.memory_space<vmem>>, vector<8x128xbf16>
    tpu.vector_store %arg8[%c0_20, %c0_21], %33 {strides = array<i32>} : memref<8x128xbf16, #tpu.memory_space<vmem>>, vector<8x128xbf16>,
    return
  }
  func.func @transform_0(%arg0: i32) -> (i32, i32) {
    %c0_i32 = arith.constant 0 : i32
    %c0_i32_0 = arith.constant 0 : i32
    return %arg0, %c0_i32 : i32, i32
  }
  func.func @transform_1(%arg0: i32) -> (i32, i32) {
    %c0_i32 = arith.constant 0 : i32
    %c0_i32_0 = arith.constant 0 : i32
    %c0_i32_1 = arith.constant 0 : i32
    return %c0_i32, %c0_i32_0 : i32, i32
  }
  func.func @transform_2(%arg0: i32) -> (i32, i32) {
    %c0_i32 = arith.constant 0 : i32
    %c0_i32_0 = arith.constant 0 : i32
    %c0_i32_1 = arith.constant 0 : i32
    return %c0_i32, %c0_i32_0 : i32, i32
  }
  func.func @transform_3(%arg0: i32) -> (i32, i32) {
    %c0_i32 = arith.constant 0 : i32
    %c0_i32_0 = arith.constant 0 : i32
    %c0_i32_1 = arith.constant 0 : i32
    return %c0_i32, %c0_i32_0 : i32, i32
  }
  func.func @transform_4(%arg0: i32) -> (i32, i32) {
    %c0_i32 = arith.constant 0 : i32
    %c0_i32_0 = arith.constant 0 : i32
    %c0_i32_1 = arith.constant 0 : i32
    return %c0_i32, %c0_i32_0 : i32, i32
  }
  func.func @transform_5(%arg0: i32) -> (i32, i32) {
    %c0_i32 = arith.constant 0 : i32
    %c0_i32_0 = arith.constant 0 : i32
    %c0_i32_1 = arith.constant 0 : i32
    return %c0_i32, %c0_i32_0 : i32, i32
  }
  func.func @transform_6(%arg0: i32) -> (i32, i32) {
    %c0_i32 = arith.constant 0 : i32
    %c0_i32_0 = arith.constant 0 : i32
    %c0_i32_1 = arith.constant 0 : i32
    return %c0_i32, %c0_i32_0 : i32, i32
  }
  func.func @transform_7(%arg0: i32) -> (i32, i32) {
    %c0_i32 = arith.constant 0 : i32
    %c0_i32_0 = arith.constant 0 : i32
    return %arg0, %c0_i32 : i32, i32
  }
}

</mosaic_0001>

<bundles_post_ra>
// kernel: actor_forward.1
= control target key start
LH: loop header
LB: loop body
LE: loop exit
PB: predicated region body
PF: predicated region fallthrough
CT: control target
= control target key end

     0   :  { %12 = vsyncpa [#allocation3], 0  ;;  %s983_s0 = inlined_call_operand.vmem [shape: bf16[8,128], index: 0, kind: input, shape index: {}]   ;;  %s984_s1 = inlined_call_operand.hbm [shape: bf16[128,256], index: 1, kind: input, shape index: {}]   ;;  %s985_s2 = inlined_call_operand.vmem [shape: f32[1,256], index: 2, kind: input, shape index: {}]   ;;  %s986_s3 = inlined_call_operand.hbm [shape: bf16[256,256], index: 3, kind: input, shape index: {}]   ;;  %s987_s4 = inlined_call_operand.vmem [shape: f32[1,256], index: 4, kind: input, shape index: {}]   ;;  %s988_s5 = inlined_call_operand.hbm [shape: bf16[256,128], index: 5, kind: input, shape index: {}]   ;;  %s989_s6 = inlined_call_operand.vmem [shape: f32[1,128], index: 6, kind: input, shape index: {}]   ;;  %s990_s7 = inlined_call_operand.vmem [shape: bf16[8,128], index: 7, kind: output, shape index: {}]  }
   0x1   :  { %13 = vsyncpa [#allocation5], 0  ;;  %s911_s24 = smov [#allocation4]   ;;  %s912_s26 = smov [#allocation2]  }
   0x2   :  { %s35_s25 = sshll.u32 %s911_s24, 4  ;;  %s21_s27 = sshll.u32 %s912_s26, 4  ;;  %s36_s25 = int_to_ptr.vmem [resolvable:$true] %s35_s25  ;;  %s22_s27 = int_to_ptr.vmem [resolvable:$true] %s21_s27 }
   0x3   :  { %s855_s28 = scalar_lea.vmem %s36_s25, 4096  ;;  %p860_p1 = scmp.lt.s32.totalorder %s36_s25, %s36_s25 }
   0x4   :  { %p856_p0 = scmp.ne.s32.totalorder %s36_s25, %s855_s28  ;;  %p861_p2 = scmp.lt.s32.totalorder %s855_s28, %s855_s28 }
   0x6   :  { %p862_p3 = por %p861_p2, %p860_p1 }
   0x8   :  { %p863_p4 = pnand %p862_p3, %p856_p0 }
   0xa   :  { %866 = shalt.err (!%p863_p4)
}
   0xb   :  { %s913_s29 = smov 128   ;;  %s914_s30 = smov 8  }
   0xc   :  { %41 = dma.hbm_to_vmem [thread:$0]  %s986_s3, 4096, %s36_s25, [#allocation5], %s913_s29, %s913_s29, %s914_s30  }
   0xd   :  { %s875_s10 = scalar_lea.vmem %s22_s27, 2048  ;;  %p880_p6 = scmp.lt.s32.totalorder %s22_s27, %s22_s27 }
   0xe   :  { %p876_p5 = scmp.ne.s32.totalorder %s22_s27, %s875_s10  ;;  %p881_p7 = scmp.lt.s32.totalorder %s875_s10, %s875_s10 }
  0x10   :  { %p882_p8 = por %p881_p7, %p880_p6 }
  0x12   :  { %p883_p9 = pnand %p882_p8, %p876_p5 }
  0x14   :  { %886 = shalt.err (!%p883_p9)
}
  0x15   :  { %27 = dma.hbm_to_vmem [thread:$0]  %s984_s1, 2048, %s22_s27, [#allocation3], %s913_s29, %s913_s29, %s914_s30  }
  0x16   :  { %s915_s13 = smov [#allocation6]  }
  0x17   :  { %s49_s14 = sshll.u32 %s915_s13, 4  ;;  %s50_s14 = int_to_ptr.vmem [resolvable:$true] %s49_s14 }
  0x18   :  { %s895_s15 = scalar_lea.vmem %s50_s14, 2048  ;;  %p900_p11 = scmp.lt.s32.totalorder %s50_s14, %s50_s14 }
  0x19   :  { %p896_p10 = scmp.ne.s32.totalorder %s50_s14, %s895_s15  ;;  %p901_p12 = scmp.lt.s32.totalorder %s895_s15, %s895_s15 }
  0x1b   :  { %p902_p13 = por %p901_p12, %p900_p11 }
  0x1d   :  { %p903_p0 = pnand %p902_p13, %p896_p10 }
  0x1f   :  { %906 = shalt.err (!%p903_p0)
}
  0x20   :  { %s916_s3 = smov 64   ;;  %s917_s16 = smov 4  }
  0x21   :  { %55 = dma.hbm_to_vmem [thread:$0]  %s988_s5, 2048, %s50_s14, [#allocation5], %s916_s3, %s916_s3, %s917_s16  }
  0x22   :  { %907 = dma.done.wait [#allocation3], 2048  }
  0x23   :  { %908 = vsyncadd [#allocation3], 4294965248 }
  0x24   :  { %909 = dma.done.wait [#allocation5], 6144  }
  0x25   :  { %910 = vsyncadd [#allocation5], 4294961152  ;;  %v918_v0 = vmov 0   ;;  %v757_v1 = vld [vmem:[#allocation2 + $0x74] ss:$8 sps:$4 sm:$0xff]   ;;  %v833_v54 = vld [vmem:[#allocation6 + $0x68] sm:$0xff]   ;;  %v87_v62 = vlaneseq }
  0x26   :  { %209 = vmatprep.mubr.bf16.mxu0 %v918_v0  ;;  %v759_v2 = vld [vmem:[#allocation2 + $0x70] ss:$8 sps:$4 sm:$0xff]   ;;  %177 = vmatprep.subr.bf16.mxu0 %v757_v1  ;;  %v760_v3 = vld [vmem:[#allocation2 + $0x64] ss:$8 sps:$4 sm:$0xff]   ;;  %v762_v4 = vld [vmem:[#allocation2 + $0x60] ss:$8 sps:$4 sm:$0xff]  }
  0x27   :  { %178 = vmatpush1.bf16.msra.mxu0 %v759_v2  ;;  %v763_v5 = vld [vmem:[#allocation2 + $0x54] ss:$8 sps:$4 sm:$0xff]   ;;  %v765_v6 = vld [vmem:[#allocation2 + $0x50] ss:$8 sps:$4 sm:$0xff]   ;;  %v766_v7 = vld [vmem:[#allocation2 + $0x44] ss:$8 sps:$4 sm:$0xff]  }
  0x28   :  { %179 = vmatprep.subr.bf16.mxu0 %v760_v3  ;;  %v768_v8 = vld [vmem:[#allocation2 + $0x40] ss:$8 sps:$4 sm:$0xff]   ;;  %v769_v9 = vld [vmem:[#allocation2 + $0x34] ss:$8 sps:$4 sm:$0xff]   ;;  %v783_v11 = vld [vmem:[#allocation4 + $0x70] ss:$8 sps:$4 sm:$0xff]  }
  0x29   :  { %v781_v10 = vld [vmem:[#allocation4 + $0x74] ss:$8 sps:$4 sm:$0xff]   ;;  %v784_v12 = vld [vmem:[#allocation4 + $0x64] ss:$8 sps:$4 sm:$0xff]   ;;  %v771_v13 = vld [vmem:[#allocation2 + $0x30] ss:$8 sps:$4 sm:$0xff]  }
  0x2a   :  { %426 = vmatprep.subr.bf16.mxu1 %v781_v10  ;;  %v786_v14 = vld [vmem:[#allocation4 + $0x60] ss:$8 sps:$4 sm:$0xff]   ;;  %v787_v15 = vld [vmem:[#allocation4 + $0x54] ss:$8 sps:$4 sm:$0xff]   ;;  %v772_v16 = vld [vmem:[#allocation2 + $0x24] ss:$8 sps:$4 sm:$0xff]  }
  0x2b   :  { %180 = vmatpush1.bf16.msra.mxu0 %v762_v4  ;;  %427 = vmatpush1.bf16.msra.mxu1 %v783_v11  ;;  %v774_v17 = vld [vmem:[#allocation2 + $0x20] ss:$8 sps:$4 sm:$0xff]   ;;  %v789_v18 = vld [vmem:[#allocation4 + $0x50] ss:$8 sps:$4 sm:$0xff]   ;;  %v790_v19 = vld [vmem:[#allocation4 + $0x44] ss:$8 sps:$4 sm:$0xff]  }
  0x2c   :  { %181 = vmatprep.subr.bf16.mxu0 %v763_v5  ;;  %428 = vmatprep.subr.bf16.mxu1 %v784_v12  ;;  %v775_v20 = vld [vmem:[#allocation2 + $0x14] ss:$8 sps:$4 sm:$0xff]   ;;  %v777_v21 = vld [vmem:[#allocation2 + $0x10] ss:$8 sps:$4 sm:$0xff]   ;;  %v792_v22 = vld [vmem:[#allocation4 + $0x40] ss:$8 sps:$4 sm:$0xff]  }
  0x2d   :  { %v793_v23 = vld [vmem:[#allocation4 + $0x34] ss:$8 sps:$4 sm:$0xff]   ;;  %v778_v24 = vld [vmem:[#allocation2 + $0x4] ss:$8 sps:$4 sm:$0xff]   ;;  %v780_v25 = vld [vmem:[#allocation2] ss:$8 sps:$4 sm:$0xff]  }
  0x2e   :  { %v795_v26 = vld [vmem:[#allocation4 + $0x30] ss:$8 sps:$4 sm:$0xff]   ;;  %v796_v27 = vld [vmem:[#allocation4 + $0x24] ss:$8 sps:$4 sm:$0xff]   ;;  %v68_v28 = vld [vmem:[%s983_s0] sm:$0xf] }
  0x2f   :  { %182 = vmatpush1.bf16.msra.mxu0 %v765_v6  ;;  %429 = vmatpush1.bf16.msra.mxu1 %v786_v14  ;;  %v798_v29 = vld [vmem:[#allocation4 + $0x20] ss:$8 sps:$4 sm:$0xff]   ;;  %v799_v30 = vld [vmem:[#allocation4 + $0x14] ss:$8 sps:$4 sm:$0xff]   ;;  %v801_v31 = vld [vmem:[#allocation4 + $0x10] ss:$8 sps:$4 sm:$0xff]  }
  0x30   :  { %183 = vmatprep.subr.bf16.mxu0 %v766_v7  ;;  %430 = vmatprep.subr.bf16.mxu1 %v787_v15  ;;  %v802_v32 = vld [vmem:[#allocation4 + $0x4] ss:$8 sps:$4 sm:$0xff]   ;;  %v804_v33 = vld [vmem:[#allocation4] ss:$8 sps:$4 sm:$0xff]   ;;  %v805_v34 = vld [vmem:[#allocation4 + $0xf4] ss:$8 sps:$4 sm:$0xff]  }
  0x31   :  { %v807_v35 = vld [vmem:[#allocation4 + $0xf0] ss:$8 sps:$4 sm:$0xff]   ;;  %v808_v36 = vld [vmem:[#allocation4 + $0xe4] ss:$8 sps:$4 sm:$0xff]   ;;  %v810_v37 = vld [vmem:[#allocation4 + $0xe0] ss:$8 sps:$4 sm:$0xff]  }
  0x32   :  { %v811_v38 = vld [vmem:[#allocation4 + $0xd4] ss:$8 sps:$4 sm:$0xff]   ;;  %v813_v39 = vld [vmem:[#allocation4 + $0xd0] ss:$8 sps:$4 sm:$0xff]   ;;  %v814_v40 = vld [vmem:[#allocation4 + $0xc4] ss:$8 sps:$4 sm:$0xff]  }
  0x33   :  { %184 = vmatpush1.bf16.msra.mxu0 %v768_v8  ;;  %431 = vmatpush1.bf16.msra.mxu1 %v789_v18  ;;  %v816_v41 = vld [vmem:[#allocation4 + $0xc0] ss:$8 sps:$4 sm:$0xff]   ;;  %v817_v42 = vld [vmem:[#allocation4 + $0xb4] ss:$8 sps:$4 sm:$0xff]   ;;  %v819_v43 = vld [vmem:[#allocation4 + $0xb0] ss:$8 sps:$4 sm:$0xff]  }
  0x34   :  { %185 = vmatprep.subr.bf16.mxu0 %v769_v9  ;;  %432 = vmatprep.subr.bf16.mxu1 %v790_v19  ;;  %v820_v44 = vld [vmem:[#allocation4 + $0xa4] ss:$8 sps:$4 sm:$0xff]   ;;  %v822_v45 = vld [vmem:[#allocation4 + $0xa0] ss:$8 sps:$4 sm:$0xff]   ;;  %v823_v46 = vld [vmem:[#allocation4 + $0x94] ss:$8 sps:$4 sm:$0xff]  }
  0x35   :  { %v825_v47 = vld [vmem:[#allocation4 + $0x90] ss:$8 sps:$4 sm:$0xff]   ;;  %v826_v48 = vld [vmem:[#allocation4 + $0x84] ss:$8 sps:$4 sm:$0xff]   ;;  %v828_v49 = vld [vmem:[#allocation4 + $0x80] ss:$8 sps:$4 sm:$0xff]  }
  0x36   :  { %v829_v50 = vld [vmem:[#allocation6 + $0x78] sm:$0xff]   ;;  %v831_v52 = vld [vmem:[#allocation6 + $0x70] sm:$0xff]   ;;  %v834_v55 = vld [vmem:[#allocation6 + $0x28] sm:$0xff]   ;;  %v88_v63 = vshrl.u32 %v87_v62, 7 }
  0x37   :  { %186 = vmatpush1.bf16.msra.mxu0 %v771_v13  ;;  %433 = vmatpush1.bf16.msra.mxu1 %v792_v22  ;;  %v830_v51 = vld [vmem:[#allocation6 + $0x38] sm:$0xff]   ;;  %v832_v53 = vld [vmem:[#allocation6 + $0x30] sm:$0xff]   ;;  %v835_v56 = vld [vmem:[#allocation6 + $0x60] sm:$0xff]  }
  0x38   :  { %187 = vmatprep.subr.bf16.mxu0 %v772_v16  ;;  %434 = vmatprep.subr.bf16.mxu1 %v793_v23  ;;  %v836_v57 = vld [vmem:[#allocation6 + $0x20] sm:$0xff]   ;;  %v837_v58 = vld [vmem:[#allocation6 + $0x58] sm:$0xff]   ;;  %v839_v60 = vld [vmem:[#allocation6 + $0x50] sm:$0xff]   ;;  %v89_v0 = vsub.s32 0, %v88_v63  ;;  %v93_v2 = vsub.s32 1, %v88_v63 }
  0x39   :  { %v838_v59 = vld [vmem:[#allocation6 + $0x18] sm:$0xff]   ;;  %v840_v61 = vld [vmem:[#allocation6 + $0x10] sm:$0xff]   ;;  %v85_v1 = vld [vmem:[%s985_s2] sm:$0x3] }
  0x3a   :  { %v90_v3 = vrot.slane %v85_v1, %v89_v0  ;;  %v94_v4 = vrot.slane %v85_v1, %v93_v2  ;;  %v841_v15 = vld [vmem:[#allocation6 + $0x48] sm:$0xff]   ;;  %v844_v18 = vld [vmem:[#allocation6] sm:$0xff]  }
  0x3b   :  { %188 = vmatpush1.bf16.msra.mxu0 %v774_v17  ;;  %435 = vmatpush1.bf16.msra.mxu1 %v795_v26  ;;  %v842_v16 = vld [vmem:[#allocation6 + $0x8] sm:$0xff]   ;;  %v843_v17 = vld [vmem:[#allocation6 + $0x40] sm:$0xff]  }
  0x3c   :  { %189 = vmatprep.subr.bf16.mxu0 %v775_v20  ;;  %436 = vmatprep.subr.bf16.mxu1 %v796_v27  ;;  %v254_v19 = vld [vmem:[%s987_s4] sm:$0x3] }
  0x3d   :  { %v259_v20 = vrot.slane %v254_v19, %v89_v0 }
  0x3f   :  { %190 = vmatpush1.bf16.msra.mxu0 %v777_v21  ;;  %437 = vmatpush1.bf16.msra.mxu1 %v798_v29  ;;  %v263_v21 = vrot.slane %v254_v19, %v93_v2 }
  0x40   :  { %191 = vmatprep.subr.bf16.mxu0 %v778_v24  ;;  %438 = vmatprep.subr.bf16.mxu1 %v799_v30 }
  0x43   :  { %192 = vmatpush1.bf16.msra.mxu0 %v780_v25  ;;  %439 = vmatpush1.bf16.msra.mxu1 %v801_v31 }
  0x44   :  { %440 = vmatprep.subr.bf16.mxu1 %v802_v32  ;;  %727 = vmatprep.subr.bf16.mxu0 %v829_v50 }
  0x46   :  { %210 = vmatmul.mubr.bf16.vlgmr.msra.gmra.mxu0 %v68_v28 }
  0x47   :  { %441 = vmatpush1.bf16.msra.mxu1 %v804_v33  ;;  %728 = vmatpush3.bf16.msra.mxu0 %v830_v51  ;;  %v710_v33 = vld [vmem:[%s989_s6] ss:$0 sm:$0xff] }
  0x48   :  { %442 = vmatprep.subr.bf16.mxu1 %v805_v34  ;;  %729 = vmatprep.subr.bf16.mxu0 %v831_v52 }
  0x4b   :  { %443 = vmatpush2.bf16.msra.mxu1 %v807_v35  ;;  %730 = vmatpush3.bf16.msra.mxu0 %v832_v53 }
  0x4c   :  { %444 = vmatprep.subr.bf16.mxu1 %v808_v36  ;;  %731 = vmatprep.subr.bf16.mxu0 %v833_v54 }
  0x4f   :  { %445 = vmatpush2.bf16.msra.mxu1 %v810_v37  ;;  %732 = vmatpush3.bf16.msra.mxu0 %v834_v55 }
  0x50   :  { %446 = vmatprep.subr.bf16.mxu1 %v811_v38  ;;  %733 = vmatprep.subr.bf16.mxu0 %v835_v56 }
  0x53   :  { %447 = vmatpush2.bf16.msra.mxu1 %v813_v39  ;;  %734 = vmatpush3.bf16.msra.mxu0 %v836_v57 }
  0x54   :  { %448 = vmatprep.subr.bf16.mxu1 %v814_v40  ;;  %735 = vmatprep.subr.bf16.mxu0 %v837_v58  ;;  %v647_v40 = vand.u32 127, %v87_v62 }
  0x56   :  { %vm652_vm0 = vcmp.ge.s32.totalorder %v647_v40, 8 }
  0x57   :  { %449 = vmatpush2.bf16.msra.mxu1 %v816_v41  ;;  %736 = vmatpush3.bf16.msra.mxu0 %v838_v59 }
  0x58   :  { %450 = vmatprep.subr.bf16.mxu1 %v817_v42  ;;  %737 = vmatprep.subr.bf16.mxu0 %v839_v60 }
  0x5b   :  { %451 = vmatpush2.bf16.msra.mxu1 %v819_v43  ;;  %738 = vmatpush3.bf16.msra.mxu0 %v840_v61 }
  0x5c   :  { %452 = vmatprep.subr.bf16.mxu1 %v820_v44  ;;  %739 = vmatprep.subr.bf16.mxu0 %v841_v15 }
  0x5f   :  { %453 = vmatpush2.bf16.msra.mxu1 %v822_v45  ;;  %740 = vmatpush3.bf16.msra.mxu0 %v842_v16 }
  0x60   :  { %454 = vmatprep.subr.bf16.mxu1 %v823_v46  ;;  %741 = vmatprep.subr.bf16.mxu0 %v843_v17 }
  0x63   :  { %455 = vmatpush2.bf16.msra.mxu1 %v825_v47  ;;  %742 = vmatpush3.bf16.msra.mxu0 %v844_v18 }
  0x64   :  { %456 = vmatprep.subr.bf16.mxu1 %v826_v48 }
  0x67   :  { %457 = vmatpush2.bf16.msra.mxu1 %v828_v49 }
 0x106   :  { %v211_v5 = vpop.f32.mrf.mxu0 }
 0x107   :  { %v212_v6 = vadd.f32 %v211_v5, %v90_v3 }
 0x108   :  { %v213_v7 = vpop.f32.mrf.mxu0 }
 0x109   :  { %v214_v8 = vadd.f32 %v213_v7, %v94_v4  ;;  %v218_v9 = vmax.f32 %v212_v6, 0.0 }
 0x10a   :  { %v215_v10 = vpop.f32.mrf.mxu0 }
 0x10b   :  { %v219_v11 = vmax.f32 %v214_v8, 0.0  ;;  %v220_v14 = vpack.c.bf16 %v218_v9, %v218_v9 }
 0x10c   :  { %v216_v12 = vpop.f32.mrf.mxu0 }
 0x10d   :  { %v221_v13 = vpack.c.bf16 %v219_v11, %v219_v11 }
 0x10f   :  { %458 = vmatprep.mubr.bf16.mxu1 %v221_v13 }
 0x110   :  { %459 = vmatmul.mubr.bf16.vlgmr.msra.gmra.mxu1 %v220_v14 }
 0x1d0   :  { %v460_v22 = vpop.f32.mrf.mxu1 }
 0x1d1   :  { %v461_v23 = vadd.f32 %v460_v22, %v259_v20 }
 0x1d2   :  { %v462_v24 = vpop.f32.mrf.mxu1 }
 0x1d3   :  { %v463_v25 = vadd.f32 %v462_v24, %v263_v21  ;;  %v467_v26 = vmax.f32 %v461_v23, 0.0 }
 0x1d4   :  { %v464_v27 = vpop.f32.mrf.mxu1 }
 0x1d5   :  { %v468_v28 = vmax.f32 %v463_v25, 0.0  ;;  %v469_v31 = vpack.c.bf16 %v467_v26, %v467_v26 }
 0x1d6   :  { %v465_v29 = vpop.f32.mrf.mxu1 }
 0x1d7   :  { %v470_v30 = vpack.c.bf16 %v468_v28, %v468_v28 }
 0x1d9   :  { %638 = vmatprep.mubr.bf16.mxu0 %v470_v30 }
 0x1da   :  { %639 = vmatmul.mubr.bf16.vlgmr.msra.gmra.mxu0 %v469_v31 }
 0x29a   :  { %v743_v32 = vpop.f32.mrf.mxu0 }
 0x29c   :  { %v744_v34 = vpop.f32.mrf.mxu0 }
 0x29d   :  { %v745_v35 = vadd.f32 %v744_v34, %v743_v32 }
 0x29e   :  { %v746_v36 = vpop.f32.mrf.mxu0 }
 0x29f   :  { %v641_v37 = vadd.f32 %v745_v35, %v710_v33 }
 0x2a0   :  { %v747_v38 = vpop.f32.mrf.mxu0 }
 0x2a1   :  { %845 = vtanh.f32 %v641_v37 }
 0x2ae   :  { %v846_v39 = vpop.eup %845 }
 0x2af   :  { %v649_v41 = vadd.f32 1.0, %v846_v39 }
 0x2b1   :  { %v650_v42 = vmul.f32 3.5, %v649_v41 }
 0x2b3   :  { %v651_v43 = vadd.f32 -5.0, %v650_v42 }
 0x2b5   :  { %v653_v44 = vsel %vm652_vm0, %v651_v43, %v641_v37 }
 0x2b6   :  { %v654_v45 = vpack.c.bf16 %v653_v44, %v653_v44 }
 0x2b8   :  { %655 = vst [vmem:[%s990_s7] sm:$0xf] %v654_v45 }
 0x2b9   :  { %660 = vsyncpa [#allocation3], 1 }
 0x2ba   :  { %661 = vsyncpa [#allocation5], 1 }

</bundles_post_ra>
